<compile_context>
chip_gen: v5e
topology: v5e:2x2
jax: 0.10.0
libtpu: 0.0.40
codegen_flags: <defaults>
</compile_context>

<pallas_src>
import functools

import jax
import jax.numpy as jnp
from jax.experimental import pallas as pl
from jax.experimental.pallas import tpu as pltpu


def _round_up(v, m):
    return ((v + m - 1) // m) * m


def _affine_kernel(x_ref, ps_ref, o_ref):
    # fn(x) = scale[row] * x + shift[row]; single unconditional FMA + store.
    scale = ps_ref[:, 0:1]
    shift = ps_ref[:, 1:2]
    o_ref[...] = (x_ref[...] * scale + shift).astype(o_ref.dtype)


def _apply_affine_2d(x2d, params):
    rows, cols = x2d.shape
    itemsize = jnp.dtype(x2d.dtype).itemsize
    sublane = 8 * max(1, 4 // itemsize)   # 8 for f32, 16 for bf16, 32 for int8
    lane = 128

    # ~4 MiB per input block -> ~16 MiB pipelined footprint: safe on v7x
    # (64 MiB VMEM), ample headroom on v5e/v6e (128 MiB).
    block_budget = 4 << 20

    # Column tiling: prefer the full width (one contiguous HBM segment per
    # block, no column padding at all).  Only split columns when a minimal
    # (sublane, cols) block would exceed the budget.
    if cols <= lane or cols * sublane * itemsize <= block_budget:
        tile_cols = cols                                 # == full dim: always legal
    else:
        tile_cols = max(lane,
                        (block_budget // (sublane * itemsize)) // lane * lane)
        tile_cols = min(tile_cols, _round_up(cols, lane))

    # Row tiling from the remaining budget; multiple of the sublane pack.
    budget_rows = max(sublane,
                      (block_budget // max(tile_cols * itemsize, 1))
                      // sublane * sublane)
    # v7x has 2 TensorCores: keep >= 2 blocks on the parallel row axis when
    # there is enough work to split (measured-neutral on v5e/v6e).
    if rows >= 2 * sublane and tile_cols == cols:
        budget_rows = min(budget_rows, _round_up(pl.cdiv(rows, 2), sublane))
    tile_rows = rows if rows <= budget_rows else budget_rows

    # cdiv grid: ragged edge blocks are masked by Pallas; no padded copies.
    grid = (pl.cdiv(rows, tile_rows), pl.cdiv(cols, tile_cols))

    return pl.pallas_call(
        _affine_kernel,
        out_shape=jax.ShapeDtypeStruct((rows, cols), x2d.dtype),
        grid=grid,
        in_specs=[
            pl.BlockSpec((tile_rows, tile_cols), lambda i, j: (i, j)),
            # Fused (scale, shift) params: constant block index along the
            # innermost (column) grid axis -> not re-DMA'd per column step.
            pl.BlockSpec((tile_rows, 2), lambda i, j: (i, 0)),
        ],
        out_specs=pl.BlockSpec((tile_rows, tile_cols), lambda i, j: (i, j)),
        compiler_params=pltpu.CompilerParams(
            dimension_semantics=("parallel", "parallel"),
            vmem_limit_bytes=40 * 1024 * 1024,
        ),
    )(x2d, params)


@functools.partial(jax.jit, static_argnames=("p", "min_pallas_bytes"))
def random_apply(x, scale, shift, key, *, p, min_pallas_bytes=1 << 20):
    """x: (N, C, H, W). scale/shift: (C,). key: PRNG key. p: apply probability."""
    N, C, H, W = x.shape
    rows, cols = N * C, H * W

    # Gate: torch `if random.random() > p: return x`  ->  apply fn iff u <= p
    u = jax.random.uniform(key, ())
    apply_fn = u <= p

    scale_x = scale.astype(x.dtype)
    shift_x = shift.astype(x.dtype)

    total_bytes = x.size * jnp.dtype(x.dtype).itemsize
    if total_bytes < min_pallas_bytes:
        # Small-input fast path: fixed pallas_call/pipeline setup overhead
        # dominates below ~1 MiB; let XLA fuse the affine.
        def _apply(x_):
            return x_ * scale_x[None, :, None, None] + shift_x[None, :, None, None]
    else:
        # Per-row (= per (n, c)) parameters, fused as (rows, 2): [:,0]=scale, [:,1]=shift.
        params = jnp.stack([jnp.tile(scale_x, N), jnp.tile(shift_x, N)], axis=-1)

        def _apply(x_):
            y2d = _apply_affine_2d(x_.reshape(rows, cols), params)
            return y2d.reshape(N, C, H, W)

    # Gate hoisted out of the kernel: the identity branch skips the
    # pallas_call entirely and moves zero HBM bytes.
    return jax.lax.cond(apply_fn, _apply, lambda x_: x_, x)


if __name__ == "__main__":
    key = jax.random.PRNGKey(0)
    k_x, k_s, k_b, k_gate = jax.random.split(key, 4)

    N, C, H, W = 2, 4, 16, 16
    x = jax.random.normal(k_x, (N, C, H, W), dtype=jnp.float32)

    # Deterministic parameters for the wrapped fn (per-channel affine).
    scale = 1.0 + 0.1 * jax.random.normal(k_s, (C,), dtype=jnp.float32)
    shift = 0.1 * jax.random.normal(k_b, (C,), dtype=jnp.float32)

    p = 0.5
    # min_pallas_bytes=0 forces the Pallas path even at this tiny test shape.
    out = random_apply(x, scale, shift, k_gate, p=p, min_pallas_bytes=0)
    jax.block_until_ready(out)

    # Reference check in plain JAX (same gate draw).
    u = jax.random.uniform(k_gate, ())
    expected = jnp.where(
        u > p, x, x * scale[None, :, None, None] + shift[None, :, None, None])
    assert jnp.allclose(out, expected, atol=1e-6), "mismatch vs reference"

    print("KERNEL_OK")
</pallas_src>

<mosaic_0001>
module attributes {stable_mosaic.version = 11 : i64} {
  func.func @_affine_kernel(%arg0: i32, %arg1: i32, %arg2: memref<8x256xf32, #tpu.memory_space<vmem>>, %arg3: memref<8x2xf32, #tpu.memory_space<vmem>>, %arg4: memref<8x256xf32, #tpu.memory_space<vmem>>) attributes {dimension_semantics = [#tpu.dimension_semantics<parallel>, #tpu.dimension_semantics<parallel>], iteration_bounds = array<i64: 1, 1>, scalar_prefetch = 0 : i64, scratch_operands = 0 : i64, tpu.core_type = #tpu.core_type<tc>, window_params = [{transform_indices = @transform_0, window_bounds = array<i64: 8, 256>}, {transform_indices = @transform_1, window_bounds = array<i64: 8, 2>}, {transform_indices = @transform_2, window_bounds = array<i64: 8, 256>}]} {
    %c0 = arith.constant 0 : index
    %c0_0 = arith.constant 0 : index
    %0 = vector.load %arg3[%c0, %c0_0] : memref<8x2xf32, #tpu.memory_space<vmem>>, vector<8x1xf32>
    %c0_1 = arith.constant 0 : index
    %c1 = arith.constant 1 : index
    %1 = vector.load %arg3[%c0_1, %c1] : memref<8x2xf32, #tpu.memory_space<vmem>>, vector<8x1xf32>
    %c0_2 = arith.constant 0 : index
    %c0_3 = arith.constant 0 : index
    %2 = vector.load %arg2[%c0_2, %c0_3] : memref<8x256xf32, #tpu.memory_space<vmem>>, vector<8x256xf32>
    %3 = vector.broadcast %0 : vector<8x1xf32> to vector<8x256xf32>
    %4 = arith.mulf %2, %3 : vector<8x256xf32>
    %5 = vector.broadcast %1 : vector<8x1xf32> to vector<8x256xf32>
    %6 = arith.addf %4, %5 : vector<8x256xf32>
    %c0_4 = arith.constant 0 : index
    %c0_5 = arith.constant 0 : index
    %7 = vector.load %arg4[%c0_4, %c0_5] : memref<8x256xf32, #tpu.memory_space<vmem>>, vector<8x256xf32>
    tpu.vector_store %arg4[%c0_4, %c0_5], %6 {strides = array<i32>} : memref<8x256xf32, #tpu.memory_space<vmem>>, vector<8x256xf32>,
    return
  }
  func.func @transform_0(%arg0: i32, %arg1: i32) -> (i32, i32) {
    %c0_i32 = arith.constant 0 : i32
    return %arg0, %arg1 : i32, i32
  }
  func.func @transform_1(%arg0: i32, %arg1: i32) -> (i32, i32) {
    %c0_i32 = arith.constant 0 : i32
    %c0_i32_0 = arith.constant 0 : i32
    return %arg0, %c0_i32 : i32, i32
  }
  func.func @transform_2(%arg0: i32, %arg1: i32) -> (i32, i32) {
    %c0_i32 = arith.constant 0 : i32
    return %arg0, %arg1 : i32, i32
  }
}

</mosaic_0001>

<bundles_post_ra>
// kernel: tile.18
= control target key start
LH: loop header
LB: loop body
LE: loop exit
PB: predicated region body
PF: predicated region fallthrough
CT: control target
= control target key end

     0   :  { %vm7_vm0 = vcmask 31744   ;;  %vm13_vm1 = vcmask 64544   ;;  %s39_s0 = inlined_call_operand.vmem [shape: f32[2,4], index: 0, kind: input, shape index: {}]   ;;  %s40_s1 = inlined_call_operand.vmem [shape: f32[8,1], index: 1, kind: output, shape index: {}]  }
   0x1   :  { %v4_v0 = vld [vmem:[%s39_s0] sm:$0x3]  ;;  %s22_s0 = smov 4  }
   0x2   :  { %5 = vst [vmem:[#allocation1] sm:$0x3] %v4_v0 }
   0x9   :  { %v10_v1 = vld [vmem:[#allocation1 + $0x1] sm:$0x1]   ;;  %v6_v2 = vld [vmem:[#allocation1] sm:$0x1]  }
   0xa   :  { %11 = vrot.lane.b32.xlu0 %v10_v1, %s22_s0  ;;  %8 = vst.msk [vmem:[#allocation0] sm:$0x1] %vm7_vm0, %v6_v2  }
  0x7c   :  { %v12_v3 = vpop.permute.xlu0 %11  }
  0x7d   :  { %14 = vst.msk [vmem:[#allocation0] sm:$0x1] %vm13_vm1, %v12_v3  }
  0x84   :  { %v17_v4 = vld [vmem:[#allocation0] sm:$0x1] }
  0x85   :  { %20 = vst [vmem:[%s40_s1] sm:$0x1] %v17_v4 }

// kernel: tile.13
= control target key start
LH: loop header
LB: loop body
LE: loop exit
PB: predicated region body
PF: predicated region fallthrough
CT: control target
= control target key end

     0   :  { %s22_s0 = inlined_call_operand.vmem [shape: f32[4], index: 0, kind: input, shape index: {}]   ;;  %s23_s1 = inlined_call_operand.vmem [shape: f32[2,4], index: 1, kind: output, shape index: {}]  }
   0x1   :  { %v4_v0 = vld [vmem:[%s22_s0] ss:$0 sm:$0xff] }
   0x2   :  { %5 = vst [vmem:[%s23_s1] sm:$0x3] %v4_v0 }

// kernel: branch_1_fun.1
= control target key start
LH: loop header
LB: loop body
LE: loop exit
PB: predicated region body
PF: predicated region fallthrough
CT: control target
= control target key end

     0   :  { %v37_v0 = vmov 0   ;;  %v38_v2 = vmov 1   ;;  %s69_s1 = inlined_call_operand.vmem [shape: f32[8,2], index: 1, kind: input, shape index: {}]   ;;  %s70_s0 = inlined_call_operand.vmem [shape: f32[8,256], index: 0, kind: input, shape index: {}]   ;;  %s71_s2 = inlined_call_operand.vmem [shape: f32[8,256], index: 2, kind: output, shape index: {}]  }
   0x1   :  { %35 = vset.pattern.permute.xlu0 %v37_v0  ;;  %v11_v1 = vld [vmem:[%s69_s1] sm:$0xff]  ;;  %v13_v5 = vld [vmem:[%s70_s0 + $0x8] sm:$0xff] }
   0x2   :  { %16 = vperm.xlu0 %35, %v11_v1   ;;  %v12_v4 = vld [vmem:[%s70_s0] sm:$0xff] }
   0xa   :  { %36 = vset.pattern.permute.xlu0 %v38_v2 }
   0xb   :  { %22 = vperm.xlu0 %36, %v11_v1  }
  0x74   :  { %v17_v3 = vpop.permute.xlu0 %16 }
  0x75   :  { %v19_v6 = vmul.f32 %v17_v3, %v12_v4  ;;  %v20_v7 = vmul.f32 %v17_v3, %v13_v5 }
  0x7d   :  { %v23_v8 = vpop.permute.xlu0 %22 }
  0x7e   :  { %v25_v9 = vadd.f32 %v23_v8, %v19_v6  ;;  %v26_v10 = vadd.f32 %v23_v8, %v20_v7 }
  0x80   :  { %27 = vst [vmem:[%s71_s2] sm:$0xff] %v25_v9 }
  0x81   :  { %28 = vst [vmem:[%s71_s2 + $0x8] sm:$0xff] %v26_v10 }

</bundles_post_ra>
